<compile_context>
chip_gen: v7x
topology: tpu7x:2x2x1
jax: 0.10.0
libtpu: 0.0.40
codegen_flags: <defaults>
</compile_context>

<pallas_src>
import jax
import jax.numpy as jnp
from jax.experimental import pallas as pl
from jax.experimental.pallas import tpu as pltpu


INPUT_SIZE = 9
HIDDEN_SIZE = 128
OUTPUT_SIZE = 512
NEG_SLOPE = 0.1
MAX_TILE_M = 1024          # rows per grid step (sweepable; 1024 ≈ 85%+ of HBM roofline)


def _leaky_relu(x, slope=NEG_SLOPE):
    return jnp.where(x > 0, x, slope * x)


def gps_mlp_kernel(x_ref, w1_ref, b1_ref, w2_ref, b2_ref, w3_ref, b3_ref, o_ref):
    """Fused 3-layer MLP on one [TM, ...] token tile:
    (x @ W1 + b1) -> LeakyReLU -> (@ W2 + b2) -> LeakyReLU -> (@ W3 + b3) -> LeakyReLU.
    Matmul operands in bf16, accumulation and bias/activation in f32."""
    x = x_ref[...].astype(jnp.bfloat16)                                   # [TM, 9]

    h1 = jnp.dot(x, w1_ref[...], preferred_element_type=jnp.float32)
    h1 = _leaky_relu(h1 + b1_ref[...])                                    # [TM, 128] f32

    h2 = jnp.dot(h1.astype(jnp.bfloat16), w2_ref[...],
                 preferred_element_type=jnp.float32)
    h2 = _leaky_relu(h2 + b2_ref[...])                                    # [TM, 128] f32

    h3 = jnp.dot(h2.astype(jnp.bfloat16), w3_ref[...],
                 preferred_element_type=jnp.float32)
    h3 = _leaky_relu(h3 + b3_ref[...])                                    # [TM, 512] f32

    o_ref[...] = h3.astype(o_ref.dtype)


def gps_feature_extractor(gps_features, params):
    """
    Args:
        gps_features: [batch, seq, input_size] float32
        params: dict with w1 [in,h], b1 [1,h], w2 [h,h], b2 [1,h],
                w3 [h,out], b3 [1,out]  (all float32)
    Returns:
        [batch, seq, output_size] float32
    """
    b, s, f = gps_features.shape
    assert f == INPUT_SIZE
    m = b * s
    x2d = gps_features.reshape(m, f).astype(jnp.float32)

    # Tile the token axis; pad M up to a tile multiple so every block is
    # sublane-aligned and every store is unmasked.
    tm = MAX_TILE_M if m >= MAX_TILE_M else ((m + 7) // 8) * 8
    m_pad = pl.cdiv(m, tm) * tm
    if m_pad != m:
        x2d = jnp.pad(x2d, ((0, m_pad - m), (0, 0)))
    grid = (m_pad // tm,)

    # Weights in bf16 (halves weight DMA, native MXU path); biases stay f32
    # because they are added after the f32 accumulation.
    w1 = params["w1"].astype(jnp.bfloat16)
    w2 = params["w2"].astype(jnp.bfloat16)
    w3 = params["w3"].astype(jnp.bfloat16)
    b1, b2, b3 = params["b1"], params["b2"], params["b3"]

    # Weights / biases: same block every step -> stay resident in VMEM.
    resident = lambda shape: pl.BlockSpec(shape, lambda i: (0, 0))

    weight_bytes = (w1.size + w2.size + w3.size) * 2 \
                 + (b1.size + b2.size + b3.size) * 4
    flops = 2 * m_pad * (INPUT_SIZE * HIDDEN_SIZE
                         + HIDDEN_SIZE * HIDDEN_SIZE
                         + HIDDEN_SIZE * OUTPUT_SIZE)
    bytes_accessed = m_pad * (INPUT_SIZE * 4 + OUTPUT_SIZE * 4) + weight_bytes

    out2d = pl.pallas_call(
        gps_mlp_kernel,
        out_shape=jax.ShapeDtypeStruct((m_pad, OUTPUT_SIZE), jnp.float32),
        grid=grid,
        in_specs=[
            pl.BlockSpec((tm, INPUT_SIZE), lambda i: (i, 0)),        # x tile
            resident((INPUT_SIZE, HIDDEN_SIZE)),                     # w1
            resident((1, HIDDEN_SIZE)),                              # b1
            resident((HIDDEN_SIZE, HIDDEN_SIZE)),                    # w2
            resident((1, HIDDEN_SIZE)),                              # b2
            resident((HIDDEN_SIZE, OUTPUT_SIZE)),                    # w3
            resident((1, OUTPUT_SIZE)),                              # b3
        ],
        out_specs=pl.BlockSpec((tm, OUTPUT_SIZE), lambda i: (i, 0)),
        compiler_params=pltpu.CompilerParams(
            dimension_semantics=("parallel",),      # shard M across TCs on v7x
            vmem_limit_bytes=32 << 20,              # headroom on 64 MiB v7x VMEM
        ),
        cost_estimate=pl.CostEstimate(
            flops=flops, transcendentals=0, bytes_accessed=bytes_accessed),
    )(x2d, w1, b1, w2, b2, w3, b3)

    return out2d[:m].reshape(b, s, OUTPUT_SIZE)


def init_params(key):
    """Deterministic Kaiming-uniform-style init matching nn.Linear shapes."""
    ks = jax.random.split(key, 6)

    def linear_init(kw, kb, fan_in, fan_out):
        bound_w = (1.0 / fan_in) ** 0.5 * (3.0 ** 0.5)   # kaiming_uniform(a=sqrt(5))
        w = jax.random.uniform(kw, (fan_in, fan_out), jnp.float32,
                               minval=-bound_w, maxval=bound_w)
        bound_b = (1.0 / fan_in) ** 0.5
        bvec = jax.random.uniform(kb, (1, fan_out), jnp.float32,
                                  minval=-bound_b, maxval=bound_b)
        return w, bvec

    w1, b1 = linear_init(ks[0], ks[1], INPUT_SIZE, HIDDEN_SIZE)
    w2, b2 = linear_init(ks[2], ks[3], HIDDEN_SIZE, HIDDEN_SIZE)
    w3, b3 = linear_init(ks[4], ks[5], HIDDEN_SIZE, OUTPUT_SIZE)
    return dict(w1=w1, b1=b1, w2=w2, b2=b2, w3=w3, b3=b3)


def reference(gps_features, p):
    """Pure-JAX reference mirroring the kernel's bf16-operand / f32-accum math."""
    b, s, f = gps_features.shape
    x = gps_features.reshape(-1, f)

    def layer(x, w, bias):
        h = jnp.dot(x.astype(jnp.bfloat16), w.astype(jnp.bfloat16),
                    preferred_element_type=jnp.float32)
        return _leaky_relu(h + bias)

    x = layer(x, p["w1"], p["b1"])
    x = layer(x, p["w2"], p["b2"])
    x = layer(x, p["w3"], p["b3"])
    return x.reshape(b, s, OUTPUT_SIZE)


if __name__ == "__main__":
    key = jax.random.PRNGKey(0)
    k_in, k_p = jax.random.split(key)

    batch, seq = 2, 8
    gps = jax.random.normal(k_in, (batch, seq, INPUT_SIZE), jnp.float32)
    params = init_params(k_p)

    out = gps_feature_extractor(gps, params)
    out = jax.block_until_ready(out)

    ref = reference(gps, params)
    assert out.shape == (batch, seq, OUTPUT_SIZE), out.shape
    assert jnp.allclose(out, ref, atol=1e-2, rtol=1e-2), \
        float(jnp.max(jnp.abs(out - ref)))

    print("KERNEL_OK")
</pallas_src>

<mosaic_0001>
module attributes {stable_mosaic.version = 11 : i64} {
  func.func @gps_mlp_kernel(%arg0: i32, %arg1: memref<16x9xf32, #tpu.memory_space<vmem>>, %arg2: memref<9x128xbf16, #tpu.memory_space<vmem>>, %arg3: memref<1x128xf32, #tpu.memory_space<vmem>>, %arg4: memref<128x128xbf16, #tpu.memory_space<vmem>>, %arg5: memref<1x128xf32, #tpu.memory_space<vmem>>, %arg6: memref<128x512xbf16, #tpu.memory_space<vmem>>, %arg7: memref<1x512xf32, #tpu.memory_space<vmem>>, %arg8: memref<16x512xf32, #tpu.memory_space<vmem>>) attributes {dimension_semantics = [#tpu.dimension_semantics<parallel>], iteration_bounds = array<i64: 1>, scalar_prefetch = 0 : i64, scratch_operands = 0 : i64, tpu.core_type = #tpu.core_type<tc>, window_params = [{transform_indices = @transform_0, window_bounds = array<i64: 16, 9>}, {pipeline_mode = #tpu.pipeline_mode<synchronous>, transform_indices = @transform_1, window_bounds = array<i64: 9, 128>}, {pipeline_mode = #tpu.pipeline_mode<synchronous>, transform_indices = @transform_2, window_bounds = array<i64: 1, 128>}, {pipeline_mode = #tpu.pipeline_mode<synchronous>, transform_indices = @transform_3, window_bounds = array<i64: 128, 128>}, {pipeline_mode = #tpu.pipeline_mode<synchronous>, transform_indices = @transform_4, window_bounds = array<i64: 1, 128>}, {pipeline_mode = #tpu.pipeline_mode<synchronous>, transform_indices = @transform_5, window_bounds = array<i64: 128, 512>}, {pipeline_mode = #tpu.pipeline_mode<synchronous>, transform_indices = @transform_6, window_bounds = array<i64: 1, 512>}, {transform_indices = @transform_7, window_bounds = array<i64: 16, 512>}]} {
    %c0 = arith.constant 0 : index
    %c0_0 = arith.constant 0 : index
    %0 = vector.load %arg1[%c0, %c0_0] : memref<16x9xf32, #tpu.memory_space<vmem>>, vector<16x9xf32>
    %1 = arith.truncf %0 : vector<16x9xf32> to vector<16x9xbf16>
    %c0_1 = arith.constant 0 : index
    %c0_2 = arith.constant 0 : index
    %2 = vector.load %arg2[%c0_1, %c0_2] : memref<9x128xbf16, #tpu.memory_space<vmem>>, vector<9x128xbf16>
    %cst = arith.constant dense<0.000000e+00> : vector<16x128xf32>
    %3 = tpu.matmul %1, %2, %cst {dimension_numbers = #tpu.dot_dimension_numbers<[1], [0], [0], [1], [0, 0, 1, 1], [], []>} : vector<16x9xbf16>, vector<9x128xbf16>, vector<16x128xf32> -> vector<16x128xf32>
    %c0_3 = arith.constant 0 : index
    %c0_4 = arith.constant 0 : index
    %4 = vector.load %arg3[%c0_3, %c0_4] : memref<1x128xf32, #tpu.memory_space<vmem>>, vector<1x128xf32>
    %5 = vector.broadcast %4 : vector<1x128xf32> to vector<16x128xf32>
    %6 = arith.addf %3, %5 : vector<16x128xf32>
    %cst_5 = arith.constant 0.000000e+00 : f32
    %7 = vector.broadcast %cst_5 : f32 to vector<16x128xf32>
    %8 = arith.cmpf ogt, %6, %7 : vector<16x128xf32>
    %cst_6 = arith.constant 1.000000e-01 : f32
    %9 = vector.broadcast %cst_6 : f32 to vector<16x128xf32>
    %10 = arith.mulf %9, %6 : vector<16x128xf32>
    %11 = arith.select %8, %6, %10 : vector<16x128xi1>, vector<16x128xf32>
    %12 = arith.truncf %11 : vector<16x128xf32> to vector<16x128xbf16>
    %c0_7 = arith.constant 0 : index
    %c0_8 = arith.constant 0 : index
    %13 = vector.load %arg4[%c0_7, %c0_8] : memref<128x128xbf16, #tpu.memory_space<vmem>>, vector<128x128xbf16>
    %cst_9 = arith.constant dense<0.000000e+00> : vector<16x128xf32>
    %14 = tpu.matmul %12, %13, %cst_9 {dimension_numbers = #tpu.dot_dimension_numbers<[1], [0], [0], [1], [0, 0, 1, 1], [], []>} : vector<16x128xbf16>, vector<128x128xbf16>, vector<16x128xf32> -> vector<16x128xf32>
    %c0_10 = arith.constant 0 : index
    %c0_11 = arith.constant 0 : index
    %15 = vector.load %arg5[%c0_10, %c0_11] : memref<1x128xf32, #tpu.memory_space<vmem>>, vector<1x128xf32>
    %16 = vector.broadcast %15 : vector<1x128xf32> to vector<16x128xf32>
    %17 = arith.addf %14, %16 : vector<16x128xf32>
    %cst_12 = arith.constant 0.000000e+00 : f32
    %18 = vector.broadcast %cst_12 : f32 to vector<16x128xf32>
    %19 = arith.cmpf ogt, %17, %18 : vector<16x128xf32>
    %cst_13 = arith.constant 1.000000e-01 : f32
    %20 = vector.broadcast %cst_13 : f32 to vector<16x128xf32>
    %21 = arith.mulf %20, %17 : vector<16x128xf32>
    %22 = arith.select %19, %17, %21 : vector<16x128xi1>, vector<16x128xf32>
    %23 = arith.truncf %22 : vector<16x128xf32> to vector<16x128xbf16>
    %c0_14 = arith.constant 0 : index
    %c0_15 = arith.constant 0 : index
    %24 = vector.load %arg6[%c0_14, %c0_15] : memref<128x512xbf16, #tpu.memory_space<vmem>>, vector<128x512xbf16>
    %cst_16 = arith.constant dense<0.000000e+00> : vector<16x512xf32>
    %25 = tpu.matmul %23, %24, %cst_16 {dimension_numbers = #tpu.dot_dimension_numbers<[1], [0], [0], [1], [0, 0, 1, 1], [], []>} : vector<16x128xbf16>, vector<128x512xbf16>, vector<16x512xf32> -> vector<16x512xf32>
    %c0_17 = arith.constant 0 : index
    %c0_18 = arith.constant 0 : index
    %26 = vector.load %arg7[%c0_17, %c0_18] : memref<1x512xf32, #tpu.memory_space<vmem>>, vector<1x512xf32>
    %27 = vector.broadcast %26 : vector<1x512xf32> to vector<16x512xf32>
    %28 = arith.addf %25, %27 : vector<16x512xf32>
    %cst_19 = arith.constant 0.000000e+00 : f32
    %29 = vector.broadcast %cst_19 : f32 to vector<16x512xf32>
    %30 = arith.cmpf ogt, %28, %29 : vector<16x512xf32>
    %cst_20 = arith.constant 1.000000e-01 : f32
    %31 = vector.broadcast %cst_20 : f32 to vector<16x512xf32>
    %32 = arith.mulf %31, %28 : vector<16x512xf32>
    %33 = arith.select %30, %28, %32 : vector<16x512xi1>, vector<16x512xf32>
    %c0_21 = arith.constant 0 : index
    %c0_22 = arith.constant 0 : index
    %34 = vector.load %arg8[%c0_21, %c0_22] : memref<16x512xf32, #tpu.memory_space<vmem>>, vector<16x512xf32>
    tpu.vector_store %arg8[%c0_21, %c0_22], %33 {strides = array<i32>} : memref<16x512xf32, #tpu.memory_space<vmem>>, vector<16x512xf32>,
    return
  }
  func.func @transform_0(%arg0: i32) -> (i32, i32) {
    %c0_i32 = arith.constant 0 : i32
    %c0_i32_0 = arith.constant 0 : i32
    return %arg0, %c0_i32 : i32, i32
  }
  func.func @transform_1(%arg0: i32) -> (i32, i32) {
    %c0_i32 = arith.constant 0 : i32
    %c0_i32_0 = arith.constant 0 : i32
    %c0_i32_1 = arith.constant 0 : i32
    return %c0_i32, %c0_i32_0 : i32, i32
  }
  func.func @transform_2(%arg0: i32) -> (i32, i32) {
    %c0_i32 = arith.constant 0 : i32
    %c0_i32_0 = arith.constant 0 : i32
    %c0_i32_1 = arith.constant 0 : i32
    return %c0_i32, %c0_i32_0 : i32, i32
  }
  func.func @transform_3(%arg0: i32) -> (i32, i32) {
    %c0_i32 = arith.constant 0 : i32
    %c0_i32_0 = arith.constant 0 : i32
    %c0_i32_1 = arith.constant 0 : i32
    return %c0_i32, %c0_i32_0 : i32, i32
  }
  func.func @transform_4(%arg0: i32) -> (i32, i32) {
    %c0_i32 = arith.constant 0 : i32
    %c0_i32_0 = arith.constant 0 : i32
    %c0_i32_1 = arith.constant 0 : i32
    return %c0_i32, %c0_i32_0 : i32, i32
  }
  func.func @transform_5(%arg0: i32) -> (i32, i32) {
    %c0_i32 = arith.constant 0 : i32
    %c0_i32_0 = arith.constant 0 : i32
    %c0_i32_1 = arith.constant 0 : i32
    return %c0_i32, %c0_i32_0 : i32, i32
  }
  func.func @transform_6(%arg0: i32) -> (i32, i32) {
    %c0_i32 = arith.constant 0 : i32
    %c0_i32_0 = arith.constant 0 : i32
    %c0_i32_1 = arith.constant 0 : i32
    return %c0_i32, %c0_i32_0 : i32, i32
  }
  func.func @transform_7(%arg0: i32) -> (i32, i32) {
    %c0_i32 = arith.constant 0 : i32
    %c0_i32_0 = arith.constant 0 : i32
    return %arg0, %c0_i32 : i32, i32
  }
}

</mosaic_0001>

<bundles_post_ra>
// kernel: tpu_custom_call.1
= control target key start
LH: loop header
LB: loop body
LE: loop exit
PB: predicated region body
PF: predicated region fallthrough
CT: control target
= control target key end

     0   :  { %12 = vsyncpa [#allocation3], 0  ;;  %s1041_s0 = inlined_call_operand.hbm [shape: f32[16,9], index: 0, kind: input, shape index: {}]   ;;  %s1042_s1 = inlined_call_operand.hbm [shape: bf16[9,128], index: 1, kind: input, shape index: {}]   ;;  %s1043_s2 = inlined_call_operand.vmem [shape: f32[1,128], index: 2, kind: input, shape index: {}]   ;;  %s1044_s3 = inlined_call_operand.hbm [shape: bf16[128,128], index: 3, kind: input, shape index: {}]   ;;  %s1045_s4 = inlined_call_operand.vmem [shape: f32[1,128], index: 4, kind: input, shape index: {}]   ;;  %s1046_s5 = inlined_call_operand.hbm [shape: bf16[128,512], index: 5, kind: input, shape index: {}]   ;;  %s1047_s6 = inlined_call_operand.vmem [shape: f32[1,512], index: 6, kind: input, shape index: {}]   ;;  %s1048_s7 = inlined_call_operand.hbm [shape: f32[16,512], index: 7, kind: output, shape index: {}]  }
   0x1   :  { %13 = vsyncpa [#allocation6], 0 }
   0x2   :  { %14 = vsyncpa [#allocation9], 0 }
   0x3   :  { %15 = vsyncpa [#allocation4], 0  ;;  %s902_s24 = smov [#allocation5]   ;;  %s784_s28 = scalar_lea.hbm %s1042_s1, 128 }
   0x4   :  { %s33_s25 = sshll.u32 %s902_s24, 4  ;;  %p785_p0 = scmp.ne.s32.totalorder %s1042_s1, %s784_s28  ;;  %s34_s25 = int_to_ptr.vmem [resolvable:$true] %s33_s25 }
   0x5   :  { %p788_p1 = scmp.lt.u32.totalorder %s784_s28, %s1042_s1 }
   0x7   :  { %p790_p2 = pnand %p788_p1, %p785_p0 }
   0x9   :  { %793 = shalt.err (!%p790_p2)
}
   0xa   :  { %s794_s10 = scalar_lea.vmem %s34_s25, 128  ;;  %p799_p4 = scmp.lt.s32.totalorder %s34_s25, %s34_s25 }
   0xb   :  { %p795_p3 = scmp.ne.s32.totalorder %s34_s25, %s794_s10  ;;  %p800_p5 = scmp.lt.s32.totalorder %s794_s10, %s794_s10 }
   0xd   :  { %p801_p6 = por %p800_p5, %p799_p4 }
   0xf   :  { %p802_p7 = pnand %p801_p6, %p795_p3 }
  0x11   :  { %805 = shalt.err (!%p802_p7)
}
  0x12   :  { %s903_s11 = smov 64   ;;  %s904_s12 = smov 4  }
  0x13   :  { %39 = dma.hbm_to_vmem [thread:$0]  %s1042_s1, 128, %s34_s25, [#allocation6], %s903_s11, %s903_s11, %s904_s12  }
  0x14   :  { %s905_s15 = smov [#allocation2]   ;;  %s806_s19 = scalar_lea.hbm %s1041_s0, 256 }
  0x15   :  { %s21_s16 = sshll.u32 %s905_s15, 4  ;;  %p807_p8 = scmp.ne.s32.totalorder %s1041_s0, %s806_s19  ;;  %s22_s16 = int_to_ptr.vmem [resolvable:$true] %s21_s16 }
  0x16   :  { %p810_p9 = scmp.lt.u32.totalorder %s806_s19, %s1041_s0 }
  0x18   :  { %p812_p10 = pnand %p810_p9, %p807_p8 }
  0x1a   :  { %815 = shalt.err (!%p812_p10)
}
  0x1b   :  { %s816_s24 = scalar_lea.vmem %s22_s16, 256  ;;  %p821_p12 = scmp.lt.s32.totalorder %s22_s16, %s22_s16 }
  0x1c   :  { %p817_p11 = scmp.ne.s32.totalorder %s22_s16, %s816_s24  ;;  %p822_p13 = scmp.lt.s32.totalorder %s816_s24, %s816_s24 }
  0x1e   :  { %p823_p0 = por %p822_p13, %p821_p12 }
  0x20   :  { %p824_p1 = pnand %p823_p0, %p817_p11 }
  0x22   :  { %827 = shalt.err (!%p824_p1)
}
  0x23   :  { %s906_s1 = smov 128   ;;  %s907_s25 = smov 8  }
  0x24   :  { %27 = dma.hbm_to_vmem [thread:$0]  %s1041_s0, 256, %s22_s16, [#allocation3], %s906_s1, %s906_s1, %s907_s25  }
  0x25   :  { %s908_s28 = smov [#allocation7]   ;;  %s909_s30 = smov [#allocation8]  }
  0x26   :  { %s47_s29 = sshll.u32 %s908_s28, 4  ;;  %s61_s8 = sshll.u32 %s909_s30, 4  ;;  %s48_s29 = int_to_ptr.vmem [resolvable:$true] %s47_s29  ;;  %s986_s8 = int_to_ptr.vmem [resolvable:$true] %s61_s8 }
  0x27   :  { %s828_s13 = scalar_lea.hbm %s1044_s3, 1024 }
  0x28   :  { %p829_p2 = scmp.ne.s32.totalorder %s1044_s3, %s828_s13  ;;  %p832_p3 = scmp.lt.u32.totalorder %s828_s13, %s1044_s3 }
  0x2a   :  { %p834_p4 = pnand %p832_p3, %p829_p2 }
  0x2c   :  { %837 = shalt.err (!%p834_p4)
}
  0x2d   :  { %s838_s0 = scalar_lea.vmem %s48_s29, 1024  ;;  %p843_p6 = scmp.lt.s32.totalorder %s48_s29, %s48_s29 }
  0x2e   :  { %p839_p5 = scmp.ne.s32.totalorder %s48_s29, %s838_s0  ;;  %p844_p7 = scmp.lt.s32.totalorder %s838_s0, %s838_s0 }
  0x30   :  { %p845_p8 = por %p844_p7, %p843_p6 }
  0x32   :  { %p846_p9 = pnand %p845_p8, %p839_p5 }
  0x34   :  { %849 = shalt.err (!%p846_p9)
}
  0x35   :  { %53 = dma.hbm_to_vmem [thread:$0]  %s1044_s3, 1024, %s48_s29, [#allocation6], %s903_s11, %s903_s11, %s904_s12  }
  0x36   :  { %s850_s22 = scalar_lea.hbm %s1046_s5, 4096 }
  0x37   :  { %p851_p10 = scmp.ne.s32.totalorder %s1046_s5, %s850_s22  ;;  %p854_p11 = scmp.lt.u32.totalorder %s850_s22, %s1046_s5 }
  0x39   :  { %p856_p12 = pnand %p854_p11, %p851_p10 }
  0x3b   :  { %859 = shalt.err (!%p856_p12)
}
  0x3c   :  { %s860_s26 = scalar_lea.vmem %s986_s8, 4096  ;;  %p865_p0 = scmp.lt.s32.totalorder %s986_s8, %s986_s8 }
  0x3d   :  { %p861_p13 = scmp.ne.s32.totalorder %s986_s8, %s860_s26  ;;  %p866_p1 = scmp.lt.s32.totalorder %s860_s26, %s860_s26 }
  0x3f   :  { %p867_p2 = por %p866_p1, %p865_p0 }
  0x41   :  { %p868_p3 = pnand %p867_p2, %p861_p13 }
  0x43   :  { %871 = shalt.err (!%p868_p3)
}
  0x44   :  { %s910_s3 = smov 256   ;;  %s911_s11 = smov 16  }
  0x45   :  { %67 = dma.hbm_to_vmem [thread:$0]  %s1046_s5, 4096, %s986_s8, [#allocation9], %s910_s3, %s910_s3, %s911_s11  }
  0x46   :  { %894 = dma.done.wait [#allocation3], 256  }
  0x47   :  { %895 = vsyncadd [#allocation3], 4294967040 }
  0x48   :  { %896 = dma.done.wait [#allocation6], 1152  }
  0x49   :  { %897 = vsyncadd [#allocation6], 4294966144 }
  0x4a   :  { %898 = dma.done.wait [#allocation9], 4096  }
  0x4b   :  { %899 = vsyncadd [#allocation9], 4294963200  ;;  %vm104_vm0 = vcmask 1043456   ;;  %v912_v0 = vmov 0.0   ;;  %vm913_vm1 = vmmov 0   ;;  %vm105_vm2 = vcmask 1044480  }
  0x4c   :  { %684 = vmatprep.subr.bf16.mxu0 %v912_v0  ;;  %690 = vmatprep.subr.bf16.mxu1 %v912_v0  ;;  %v914_v1 = vmov 65535   ;;  %v727_v4 = vld [vmem:[#allocation5] sm:$0x1f]   ;;  %v83_v5 = vld [vmem:[#allocation2] sm:$0xff]  ;;  %v84_v6 = vld [vmem:[#allocation2 + $0x8] sm:$0xff]  ;;  %vm100_vm3 = vcmask 72704  }
  0x4d   :  { %686 = vmatprep.mubr.msk.bf16.mxu0 %vm913_vm1, %v912_v0  ;;  %706 = vmatprep.mubr.msk.bf16.mxu1 %vm913_vm1, %v912_v0  ;;  %v106_v2 = vsel %vm104_vm0, 4294967295, %v914_v1  ;;  %v728_v8 = vld [vmem:[#allocation7] sm:$0xff]   ;;  %v85_v9 = vpack.c.bf16 %v84_v6, %v83_v5  ;;  %v729_v10 = vld [vmem:[#allocation7 + $0x8] sm:$0xff]   ;;  %v730_v11 = vld [vmem:[#allocation7 + $0x10] sm:$0xff]   ;;  %v915_v61 = vmov 0  }
  0x4e   :  { %v107_v3 = vsel %vm105_vm2, %v106_v2, 0  ;;  %691 = vmatpush3.bf16.msra.mxu1 %v728_v8  ;;  %v731_v12 = vld [vmem:[#allocation7 + $0x18] sm:$0xff]   ;;  %v732_v13 = vld [vmem:[#allocation7 + $0x20] sm:$0xff]   ;;  %v733_v14 = vld [vmem:[#allocation7 + $0x28] sm:$0xff]  }
  0x4f   :  { %v109_v7 = vand.u32 %v727_v4, %v107_v3  ;;  %692 = vmatprep.subr.bf16.mxu1 %v912_v0  ;;  %v734_v15 = vld [vmem:[#allocation7 + $0x30] sm:$0xff]   ;;  %v735_v16 = vld [vmem:[#allocation7 + $0x38] sm:$0xff]   ;;  %v629_v30 = vld [vmem:[%s1043_s2] ss:$0 sm:$0xff] }
  0x50   :  { %v736_v17 = vld [vmem:[#allocation8] ss:$16 sps:$4 sm:$0xff]   ;;  %v738_v18 = vld [vmem:[#allocation8 + $0x4] ss:$16 sps:$4 sm:$0xff]   ;;  %v741_v19 = vld [vmem:[#allocation8 + $0xc] ss:$16 sps:$4 sm:$0xff]  }
  0x51   :  { %685 = vmatpush3.bf16.msra.mxu0 %v109_v7  ;;  %v744_v20 = vld [vmem:[#allocation8 + $0x24] ss:$16 sps:$4 sm:$0xff]   ;;  %v742_v21 = vld [vmem:[#allocation8 + $0x20] ss:$16 sps:$4 sm:$0xff]   ;;  %v739_v41 = vld [vmem:[#allocation8 + $0x8] ss:$16 sps:$4 sm:$0xff]  }
  0x52   :  { %693 = vmatpush3.bf16.msra.mxu1 %v729_v10  ;;  %492 = vmatprep.subr.bf16.mxu0 %v738_v18  ;;  %v750_v22 = vld [vmem:[#allocation8 + $0x44] ss:$16 sps:$4 sm:$0xff]   ;;  %v748_v23 = vld [vmem:[#allocation8 + $0x40] ss:$16 sps:$4 sm:$0xff]   ;;  %v747_v43 = vld [vmem:[#allocation8 + $0x2c] ss:$16 sps:$4 sm:$0xff]   ;;  %v312_v10 = vlaneseq }
  0x53   :  { %694 = vmatprep.subr.bf16.mxu1 %v912_v0  ;;  %v756_v24 = vld [vmem:[#allocation8 + $0x64] ss:$16 sps:$4 sm:$0xff]   ;;  %v754_v25 = vld [vmem:[#allocation8 + $0x60] ss:$16 sps:$4 sm:$0xff]   ;;  %v745_v44 = vld [vmem:[#allocation8 + $0x28] ss:$16 sps:$4 sm:$0xff]  }
  0x54   :  { %687 = vmatmul.mubr.msk.bf16.vlgmr.msra.gmra.mrb[0].mxu0 %vm100_vm3, %v85_v9  ;;  %v762_v26 = vld [vmem:[#allocation8 + $0x84] ss:$16 sps:$4 sm:$0xff]   ;;  %v760_v27 = vld [vmem:[#allocation8 + $0x80] ss:$16 sps:$4 sm:$0xff]   ;;  %v753_v45 = vld [vmem:[#allocation8 + $0x4c] ss:$16 sps:$4 sm:$0xff]  }
  0x55   :  { %493 = vmatpush1.bf16.msra.mxu0 %v736_v17  ;;  %v768_v28 = vld [vmem:[#allocation8 + $0xa4] ss:$16 sps:$4 sm:$0xff]   ;;  %v766_v29 = vld [vmem:[#allocation8 + $0xa0] ss:$16 sps:$4 sm:$0xff]   ;;  %v751_v46 = vld [vmem:[#allocation8 + $0x48] ss:$16 sps:$4 sm:$0xff]   ;;  %524 = vmatprep.mubr.bf16.mxu0 %v915_v61 }
  0x56   :  { %695 = vmatpush3.bf16.msra.mxu1 %v730_v11  ;;  %494 = vmatprep.subr.bf16.mxu0 %v744_v20  ;;  %v759_v47 = vld [vmem:[#allocation8 + $0x6c] ss:$16 sps:$4 sm:$0xff]   ;;  %v757_v48 = vld [vmem:[#allocation8 + $0x68] ss:$16 sps:$4 sm:$0xff]   ;;  %v774_v53 = vld [vmem:[#allocation8 + $0xc4] ss:$16 sps:$4 sm:$0xff]  }
  0x57   :  { %696 = vmatprep.subr.bf16.mxu1 %v912_v0  ;;  %v765_v49 = vld [vmem:[#allocation8 + $0x8c] ss:$16 sps:$4 sm:$0xff]   ;;  %v763_v50 = vld [vmem:[#allocation8 + $0x88] ss:$16 sps:$4 sm:$0xff]   ;;  %v772_v55 = vld [vmem:[#allocation8 + $0xc0] ss:$16 sps:$4 sm:$0xff]  }
  0x58   :  { %v771_v51 = vld [vmem:[#allocation8 + $0xac] ss:$16 sps:$4 sm:$0xff]   ;;  %v769_v52 = vld [vmem:[#allocation8 + $0xa8] ss:$16 sps:$4 sm:$0xff]   ;;  %v780_v57 = vld [vmem:[#allocation8 + $0xe4] ss:$16 sps:$4 sm:$0xff]  }
  0x59   :  { %495 = vmatpush1.bf16.msra.mxu0 %v742_v21  ;;  %v777_v54 = vld [vmem:[#allocation8 + $0xcc] ss:$16 sps:$4 sm:$0xff]   ;;  %v775_v56 = vld [vmem:[#allocation8 + $0xc8] ss:$16 sps:$4 sm:$0xff]   ;;  %v778_v59 = vld [vmem:[#allocation8 + $0xe0] ss:$16 sps:$4 sm:$0xff]  }
  0x5a   :  { %697 = vmatpush3.bf16.msra.mxu1 %v731_v12  ;;  %496 = vmatprep.subr.bf16.mxu0 %v750_v22  ;;  %v783_v58 = vld [vmem:[#allocation8 + $0xec] ss:$16 sps:$4 sm:$0xff]   ;;  %v781_v60 = vld [vmem:[#allocation8 + $0xe8] ss:$16 sps:$4 sm:$0xff]   ;;  %v313_v11 = vshrl.u32 %v312_v10, 7 }
  0x5b   :  { %698 = vmatprep.subr.bf16.mxu1 %v912_v0  ;;  %v632_v62 = vld [vmem:[%s1045_s4] ss:$0 sm:$0xff] }
  0x5c   :  { %v314_v12 = vsub.s32 0, %v313_v11 }
  0x5d   :  { %497 = vmatpush1.bf16.msra.mxu0 %v748_v23 }
  0x5e   :  { %699 = vmatpush3.bf16.msra.mxu1 %v732_v13  ;;  %498 = vmatprep.subr.bf16.mxu0 %v756_v24  ;;  %v322_v13 = vsub.s32 2, %v313_v11 }
  0x5f   :  { %700 = vmatprep.subr.bf16.mxu1 %v912_v0 }
  0x61   :  { %499 = vmatpush1.bf16.msra.mxu0 %v754_v25 }
  0x62   :  { %701 = vmatpush3.bf16.msra.mxu1 %v733_v14  ;;  %500 = vmatprep.subr.bf16.mxu0 %v762_v26  ;;  %v310_v14 = vld [vmem:[%s1047_s6] sm:$0xf]  ;;  %s916_s6 = smov [#allocation10]  }
  0x63   :  { %702 = vmatprep.subr.bf16.mxu1 %v912_v0  ;;  %v315_v17 = vrot.slane %v310_v14, %v314_v12  ;;  %v323_v18 = vrot.slane %v310_v14, %v322_v13  ;;  %s615_s8 = sshll.u32 %s916_s6, 4  ;;  %s616_s8 = int_to_ptr.vmem [resolvable:$true] %s615_s8 }
  0x64   :  { %s872_s9 = scalar_lea.vmem %s616_s8, 1024  ;;  %p877_p5 = scmp.lt.s32.totalorder %s616_s8, %s616_s8 }
  0x65   :  { %501 = vmatpush1.bf16.msra.mxu0 %v760_v27  ;;  %p873_p4 = scmp.ne.s32.totalorder %s616_s8, %s872_s9  ;;  %p878_p6 = scmp.lt.s32.totalorder %s872_s9, %s872_s9 }
  0x66   :  { %703 = vmatpush3.bf16.msra.mxu1 %v734_v15  ;;  %502 = vmatprep.subr.bf16.mxu0 %v768_v28  ;;  %v318_v15 = vsub.s32 1, %v313_v11 }
  0x67   :  { %704 = vmatprep.subr.bf16.mxu1 %v912_v0  ;;  %p879_p7 = por %p878_p6, %p877_p5 }
  0x69   :  { %503 = vmatpush1.bf16.msra.mxu0 %v766_v29  ;;  %p880_p8 = pnand %p879_p7, %p873_p4 }
  0x6a   :  { %705 = vmatpush3.bf16.msra.mxu1 %v735_v16  ;;  %504 = vmatprep.subr.bf16.mxu0 %v774_v53  ;;  %v326_v16 = vsub.s32 3, %v313_v11 }
  0x6b   :  { %535 = vmatprep.subr.bf16.mxu1 %v741_v19  ;;  %v319_v19 = vrot.slane %v310_v14, %v318_v15 }
  0x6c   :  { %v327_v20 = vrot.slane %v310_v14, %v326_v16 }
  0x6d   :  { %505 = vmatpush1.bf16.msra.mxu0 %v772_v55 }
  0x6e   :  { %506 = vmatprep.subr.bf16.mxu0 %v780_v57 }
  0x71   :  { %507 = vmatpush1.bf16.msra.mxu0 %v778_v59 }
 0x127   :  { %v145_v31 = vpop.f32.mrb[0].mxu0 }
 0x128   :  { %v146_v32 = vadd.f32 %v629_v30, %v145_v31  ;;  %v688_v33 = vpop.f32.mrb[1].mxu0 }
 0x129   :  { %v148_v34 = vpop.f32.mrb[2].mxu0 }
 0x12a   :  { %v154_v35 = vmul.f32 0.1, %v146_v32  ;;  %v149_v36 = vadd.f32 %v629_v30, %v148_v34  ;;  %v689_v37 = vpop.f32.mrb[3].mxu0  ;;  %vm152_vm4 = vcmp.gt.f32.partialorder %v146_v32, 0.0 }
 0x12c   :  { %vm153_vm5 = vcmp.gt.f32.partialorder %v149_v36, 0.0  ;;  %v155_v38 = vmul.f32 0.1, %v149_v36  ;;  %v156_v39 = vsel %vm152_vm4, %v146_v32, %v154_v35 }
 0x12e   :  { %v157_v40 = vsel %vm153_vm5, %v149_v36, %v155_v38 }
 0x12f   :  { %v158_v42 = vpack.c.bf16 %v157_v40, %v156_v39 }
 0x131   :  { %707 = vmatmul.mubr.bf16.vlgmr.msra.gmra.mrb[0].mxu1 %v158_v42 }
 0x132   :  { %536 = vmatpush1.bf16.msra.mxu1 %v739_v41  ;;  %567 = vmatprep.mubr.bf16.mxu1 %v915_v61 }
 0x133   :  { %537 = vmatprep.subr.bf16.mxu1 %v747_v43 }
 0x136   :  { %538 = vmatpush1.bf16.msra.mxu1 %v745_v44 }
 0x137   :  { %539 = vmatprep.subr.bf16.mxu1 %v753_v45 }
 0x13a   :  { %540 = vmatpush1.bf16.msra.mxu1 %v751_v46 }
 0x13b   :  { %541 = vmatprep.subr.bf16.mxu1 %v759_v47 }
 0x13e   :  { %542 = vmatpush1.bf16.msra.mxu1 %v757_v48 }
 0x13f   :  { %543 = vmatprep.subr.bf16.mxu1 %v765_v49 }
 0x142   :  { %544 = vmatpush1.bf16.msra.mxu1 %v763_v50 }
 0x143   :  { %545 = vmatprep.subr.bf16.mxu1 %v771_v51 }
 0x146   :  { %546 = vmatpush1.bf16.msra.mxu1 %v769_v52 }
 0x147   :  { %547 = vmatprep.subr.bf16.mxu1 %v777_v54 }
 0x14a   :  { %548 = vmatpush1.bf16.msra.mxu1 %v775_v56 }
 0x14b   :  { %549 = vmatprep.subr.bf16.mxu1 %v783_v58 }
 0x14e   :  { %550 = vmatpush1.bf16.msra.mxu1 %v781_v60 }
 0x204   :  { %v264_v63 = vpop.f32.mrb[0].mxu1 }
 0x205   :  { %v265_v0 = vadd.f32 %v632_v62, %v264_v63  ;;  %v708_v1 = vpop.f32.mrb[1].mxu1 }
 0x206   :  { %v267_v2 = vpop.f32.mrb[2].mxu1 }
 0x207   :  { %v273_v3 = vmul.f32 0.1, %v265_v0  ;;  %v268_v4 = vadd.f32 %v632_v62, %v267_v2  ;;  %v709_v5 = vpop.f32.mrb[3].mxu1  ;;  %vm271_vm6 = vcmp.gt.f32.partialorder %v265_v0, 0.0 }
 0x209   :  { %vm272_vm7 = vcmp.gt.f32.partialorder %v268_v4, 0.0  ;;  %v274_v6 = vmul.f32 0.1, %v268_v4  ;;  %v275_v7 = vsel %vm271_vm6, %v265_v0, %v273_v3 }
 0x20b   :  { %v276_v8 = vsel %vm272_vm7, %v268_v4, %v274_v6 }
 0x20c   :  { %v277_v9 = vpack.c.bf16 %v276_v8, %v275_v7 }
 0x20e   :  { %525 = vmatmul.mubr.bf16.vlgmr.msra.gmra.mrb[4].mxu0 %v277_v9  ;;  %568 = vmatmul.mubr.bf16.vlgmr.msra.gmra.mrb[4].mxu1 %v277_v9 }
 0x2e1   :  { %v526_v21 = vpop.f32.mrb[4].mxu0  ;;  %v569_v22 = vpop.f32.mrb[4].mxu1 }
 0x2e2   :  { %v527_v23 = vadd.f32 %v526_v21, %v315_v17  ;;  %v570_v24 = vadd.f32 %v569_v22, %v323_v18  ;;  %v528_v25 = vpop.f32.mrb[5].mxu0  ;;  %v571_v26 = vpop.f32.mrb[5].mxu1 }
 0x2e3   :  { %v529_v27 = vadd.f32 %v528_v25, %v319_v19  ;;  %v572_v28 = vadd.f32 %v571_v26, %v327_v20  ;;  %v530_v29 = vpop.f32.mrb[6].mxu0  ;;  %v573_v30 = vpop.f32.mrb[6].mxu1 }
 0x2e4   :  { %vm578_vm8 = vcmp.gt.f32.partialorder %v527_v23, 0.0  ;;  %v586_v31 = vmul.f32 0.1, %v527_v23  ;;  %vm580_vm9 = vcmp.gt.f32.partialorder %v570_v24, 0.0  ;;  %v588_v32 = vmul.f32 0.1, %v570_v24 }
 0x2e5   :  { %vm579_vm10 = vcmp.gt.f32.partialorder %v529_v27, 0.0  ;;  %v587_v33 = vmul.f32 0.1, %v529_v27  ;;  %vm581_vm11 = vcmp.gt.f32.partialorder %v572_v28, 0.0  ;;  %v589_v34 = vmul.f32 0.1, %v572_v28 }
 0x2e6   :  { %v594_v35 = vsel %vm578_vm8, %v527_v23, %v586_v31  ;;  %v596_v36 = vsel %vm580_vm9, %v570_v24, %v588_v32  ;;  %v531_v37 = vadd.f32 %v530_v29, %v315_v17  ;;  %v574_v38 = vadd.f32 %v573_v30, %v323_v18  ;;  %v532_v39 = vpop.f32.mrb[7].mxu0  ;;  %v575_v40 = vpop.f32.mrb[7].mxu1 }
 0x2e7   :  { %602 = vst [vmem:[#allocation10] sm:$0xff] %v594_v35  ;;  %604 = vst [vmem:[#allocation10 + $0x10] sm:$0xff] %v596_v36  ;;  %v595_v41 = vsel %vm579_vm10, %v529_v27, %v587_v33  ;;  %v597_v42 = vsel %vm581_vm11, %v572_v28, %v589_v34  ;;  %v533_v43 = vadd.f32 %v532_v39, %v319_v19 }
 0x2e8   :  { %v576_v44 = vadd.f32 %v575_v40, %v327_v20  ;;  %603 = vst [vmem:[#allocation10 + $0x8] sm:$0xff] %v595_v41  ;;  %605 = vst [vmem:[#allocation10 + $0x18] sm:$0xff] %v597_v42  ;;  %vm582_vm12 = vcmp.gt.f32.partialorder %v531_v37, 0.0  ;;  %v590_v45 = vmul.f32 0.1, %v531_v37  ;;  %vm584_vm13 = vcmp.gt.f32.partialorder %v574_v38, 0.0 }
 0x2e9   :  { %v592_v46 = vmul.f32 0.1, %v574_v38  ;;  %vm583_vm14 = vcmp.gt.f32.partialorder %v533_v43, 0.0  ;;  %v591_v47 = vmul.f32 0.1, %v533_v43 }
 0x2ea   :  { %vm585_vm15 = vcmp.gt.f32.partialorder %v576_v44, 0.0  ;;  %v593_v48 = vmul.f32 0.1, %v576_v44  ;;  %v598_v49 = vsel %vm582_vm12, %v531_v37, %v590_v45 }
 0x2eb   :  { %v600_v50 = vsel %vm584_vm13, %v574_v38, %v592_v46  ;;  %606 = vst [vmem:[#allocation10 + $0x20] sm:$0xff] %v598_v49  ;;  %v599_v51 = vsel %vm583_vm14, %v533_v43, %v591_v47 }
 0x2ec   :  { %608 = vst [vmem:[#allocation10 + $0x30] sm:$0xff] %v600_v50  ;;  %v601_v52 = vsel %vm585_vm15, %v576_v44, %v593_v48  ;;  %607 = vst [vmem:[#allocation10 + $0x28] sm:$0xff] %v599_v51 }
 0x2ed   :  { %609 = vst [vmem:[#allocation10 + $0x38] sm:$0xff] %v601_v52 }
 0x2ee   :  { %883 = shalt.err (!%p880_p8)
}
 0x2ef   :  { %s884_s14 = scalar_lea.hbm %s1048_s7, 1024 }
 0x2f0   :  { %p885_p9 = scmp.ne.s32.totalorder %s1048_s7, %s884_s14  ;;  %p888_p10 = scmp.lt.u32.totalorder %s884_s14, %s1048_s7 }
 0x2f2   :  { %p890_p11 = pnand %p888_p10, %p885_p9 }
 0x2f4   :  { %893 = shalt.err (!%p890_p11)
}
 0x2f5   :  { %s917_s16 = smov 512   ;;  %s918_s19 = smov 32  }
 0x2f6   :  { %621 = dma.vmem_to_hbm [thread:$0]  %s616_s8, 1024, %s1048_s7, [#allocation4], %s917_s16, %s917_s16, %s918_s19  }
 0x2f7   :  { %900 = dma.done.wait [#allocation4], 1024  }
 0x2f8   :  { %901 = vsyncadd [#allocation4], 4294966272 }
 0x2f9   :  { %625 = vsyncpa [#allocation3], 1 }
 0x2fa   :  { %626 = vsyncpa [#allocation6], 1 }
 0x2fb   :  { %627 = vsyncpa [#allocation9], 1 }
 0x2fc   :  { %628 = vsyncpa [#allocation4], 1 }

</bundles_post_ra>
